<compile_context>
chip_gen: v6e
topology: v6e:2x2x1
jax: 0.10.0
libtpu: 0.0.40
codegen_flags: <defaults>
</compile_context>

<pallas_src>
import math

import jax
import jax.numpy as jnp
import numpy as np
from jax import lax
from jax.experimental import pallas as pl
from jax.experimental.pallas import tpu as pltpu

B, T, D, H = 2, 8, 16, 4   # batch, seq len, vec_dim, lstm hidden
OUT = 2                    # linear output classes


def rnnlm_kernel(seq_ref, len_ref, w_ih_ref, w_hh_ref, b_ref,
                 w_lin_ref, b_lin_ref, out_ref):
    # seq_ref:   (T*B, D) f32   time-major flat: row t*B + b == x[b, t, :]
    # len_ref:   (B, 1)    i32
    # w_ih_ref:  (D, 4H)   f32  (transposed in wrapper)
    # w_hh_ref:  (H, 4H)   f32  (transposed in wrapper)
    # b_ref:     (1, 4H)   f32  (b_ih + b_hh)
    # w_lin_ref: (H, OUT)  f32  (transposed in wrapper)
    # b_lin_ref: (1, OUT)  f32
    # out_ref:   (B, OUT)  f32
    x = seq_ref[...]                          # (T*B, D)
    lengths = len_ref[...]                    # (B, 1)
    w_hh_t = w_hh_ref[...]                    # (H, 4H)
    w_lin_t = w_lin_ref[...]                  # (H, OUT)

    # --- hoisted input projection: one amortized MXU matmul, off the serial
    # recurrence path.
    gates_x = (jnp.dot(x, w_ih_ref[...], preferred_element_type=jnp.float32)
               + b_ref[...])                  # (T*B, 4H)

    # --- precompute "t == length-1" masks once (B, T); per-step use is a
    # static lane slice + one select.
    t_iota = lax.broadcasted_iota(jnp.int32, (B, T), 1)
    masks = t_iota == (lengths - 1)           # (B, T) bool

    # pre-sliced recurrent weight rows (static, hoisted out of the loop)
    w_hh_rows = [w_hh_t[k:k + 1, :] for k in range(H)]      # each (1, 4H)

    h = jnp.zeros((B, H), jnp.float32)
    c = jnp.zeros((B, H), jnp.float32)
    last_h = jnp.zeros((B, H), jnp.float32)

    # T is a compile-time constant: fully unrolled recurrence, VPU/EUP only.
    for t in range(T):
        gx = gates_x[t * B:(t + 1) * B, :]                  # (B, 4H) static slice
        # h @ W_hh^T as 4 broadcast-muls + adds on the VPU (no MXU round-trip)
        gh = h[:, 0:1] * w_hh_rows[0]
        for k in range(1, H):
            gh = gh + h[:, k:k + 1] * w_hh_rows[k]
        gates = gx + gh                                     # (B, 4H)
        # PyTorch LSTM gate order: input, forget, cell (g), output
        i_g = jax.nn.sigmoid(gates[:, 0 * H:1 * H])
        f_g = jax.nn.sigmoid(gates[:, 1 * H:2 * H])
        g_g = jnp.tanh(gates[:, 2 * H:3 * H])
        o_g = jax.nn.sigmoid(gates[:, 3 * H:4 * H])
        c = f_g * c + i_g * g_g
        h = o_g * jnp.tanh(c)
        last_h = jnp.where(masks[:, t:t + 1], h, last_h)

    # --- Linear(4 -> 2) head, also on the VPU (2x4 . 4x2 is far too small
    # for an MXU tile).
    out = jnp.broadcast_to(b_lin_ref[...], (B, OUT))
    for k in range(H):
        out = out + last_h[:, k:k + 1] * w_lin_t[k:k + 1, :]
    out_ref[...] = out


def rnnlm_forward(seq, lengths, params):
    w_ih, w_hh, b_ih, b_hh, w_lin, b_lin = params
    seq = seq.astype(jnp.float32)
    # time-major flatten so the kernel projects all timesteps with one matmul
    # and per-step reads are static slices.
    seq_flat = jnp.transpose(seq, (1, 0, 2)).reshape(T * B, D)
    len2d = lengths.astype(jnp.int32).reshape(B, 1)
    w_ih_t = jnp.transpose(w_ih)              # (D, 4H)
    w_hh_t = jnp.transpose(w_hh)              # (H, 4H)
    b_sum = (b_ih + b_hh).reshape(1, 4 * H)   # (1, 4H)
    w_lin_t = jnp.transpose(w_lin)            # (H, OUT)
    b_lin2d = b_lin.reshape(1, OUT)

    vmem = pl.BlockSpec(memory_space=pltpu.MemorySpace.VMEM)
    return pl.pallas_call(
        rnnlm_kernel,
        out_shape=jax.ShapeDtypeStruct((B, OUT), jnp.float32),
        in_specs=[vmem] * 7,
        out_specs=vmem,
    )(seq_flat, len2d, w_ih_t, w_hh_t, b_sum, w_lin_t, b_lin2d)


def init_params(key):
    """Deterministic parameter init mimicking the PyTorch module's init."""
    k = jax.random.split(key, 6)

    def xavier(kk, shape):
        fan_out, fan_in = shape
        a = math.sqrt(6.0 / (fan_in + fan_out))
        return jax.random.uniform(kk, shape, jnp.float32, -a, a)

    w_ih = xavier(k[0], (4 * H, D))
    w_hh = xavier(k[1], (4 * H, H))
    bb = 1.0 / math.sqrt(H)
    b_ih = jax.random.uniform(k[2], (4 * H,), jnp.float32, -bb, bb)
    b_hh = jax.random.uniform(k[3], (4 * H,), jnp.float32, -bb, bb)
    bl = 1.0 / math.sqrt(H)
    w_lin = jax.random.uniform(k[4], (OUT, H), jnp.float32, -bl, bl)
    b_lin = jax.random.uniform(k[5], (OUT,), jnp.float32, -bl, bl)
    return w_ih, w_hh, b_ih, b_hh, w_lin, b_lin


def rnnlm_reference(seq, lengths, params):
    """Pure-JAX reference of the same forward pass, for a silent sanity check."""
    w_ih, w_hh, b_ih, b_hh, w_lin, b_lin = params
    h = jnp.zeros((B, H), jnp.float32)
    c = jnp.zeros((B, H), jnp.float32)
    last_h = jnp.zeros((B, H), jnp.float32)
    for t in range(T):
        x_t = seq[:, t, :]
        gates = x_t @ w_ih.T + h @ w_hh.T + b_ih + b_hh
        i_g = jax.nn.sigmoid(gates[:, 0 * H:1 * H])
        f_g = jax.nn.sigmoid(gates[:, 1 * H:2 * H])
        g_g = jnp.tanh(gates[:, 2 * H:3 * H])
        o_g = jax.nn.sigmoid(gates[:, 3 * H:4 * H])
        c = f_g * c + i_g * g_g
        h = o_g * jnp.tanh(c)
        last_h = jnp.where((lengths.reshape(B, 1) - 1) == t, h, last_h)
    return last_h @ w_lin.T + b_lin


if __name__ == "__main__":
    key = jax.random.PRNGKey(0)
    k_param, k_seq = jax.random.split(key)
    params = init_params(k_param)
    seq = jax.random.normal(k_seq, (B, T, D), jnp.float32)
    # lengths sorted descending (pack_padded_sequence enforce_sorted semantics)
    lengths = jnp.array([8, 5], dtype=jnp.int32)

    out = rnnlm_forward(seq, lengths, params)
    out = jax.block_until_ready(out)

    ref = rnnlm_reference(seq, lengths, params)
    assert out.shape == (B, OUT)
    assert np.allclose(np.asarray(out), np.asarray(ref), atol=1e-5, rtol=1e-5)

    print("KERNEL_OK")
</pallas_src>

<mosaic_0001>
module attributes {stable_mosaic.version = 11 : i64} {
  func.func @rnnlm_kernel(%arg0: memref<16x16xf32, #tpu.memory_space<vmem>>, %arg1: memref<2x1xi32, #tpu.memory_space<vmem>>, %arg2: memref<16x16xf32, #tpu.memory_space<vmem>>, %arg3: memref<4x16xf32, #tpu.memory_space<vmem>>, %arg4: memref<1x16xf32, #tpu.memory_space<vmem>>, %arg5: memref<4x2xf32, #tpu.memory_space<vmem>>, %arg6: memref<1x2xf32, #tpu.memory_space<vmem>>, %arg7: memref<2x2xf32, #tpu.memory_space<vmem>>) attributes {dimension_semantics = [], scalar_prefetch = 0 : i64, scratch_operands = 0 : i64, tpu.core_type = #tpu.core_type<tc>} {
    %c0 = arith.constant 0 : index
    %c0_0 = arith.constant 0 : index
    %0 = vector.load %arg0[%c0, %c0_0] : memref<16x16xf32, #tpu.memory_space<vmem>>, vector<16x16xf32>
    %c0_1 = arith.constant 0 : index
    %c0_2 = arith.constant 0 : index
    %1 = vector.load %arg1[%c0_1, %c0_2] : memref<2x1xi32, #tpu.memory_space<vmem>>, vector<2x1xi32>
    %c0_3 = arith.constant 0 : index
    %c0_4 = arith.constant 0 : index
    %2 = vector.load %arg3[%c0_3, %c0_4] : memref<4x16xf32, #tpu.memory_space<vmem>>, vector<4x16xf32>
    %c0_5 = arith.constant 0 : index
    %c0_6 = arith.constant 0 : index
    %3 = vector.load %arg5[%c0_5, %c0_6] : memref<4x2xf32, #tpu.memory_space<vmem>>, vector<4x2xf32>
    %c0_7 = arith.constant 0 : index
    %c0_8 = arith.constant 0 : index
    %4 = vector.load %arg2[%c0_7, %c0_8] : memref<16x16xf32, #tpu.memory_space<vmem>>, vector<16x16xf32>
    %cst = arith.constant dense<0.000000e+00> : vector<16x16xf32>
    %5 = tpu.matmul %0, %4, %cst {dimension_numbers = #tpu.dot_dimension_numbers<[1], [0], [0], [1], [0, 0, 1, 1], [], []>} : vector<16x16xf32>, vector<16x16xf32>, vector<16x16xf32> -> vector<16x16xf32>
    %c0_9 = arith.constant 0 : index
    %c0_10 = arith.constant 0 : index
    %6 = vector.load %arg4[%c0_9, %c0_10] : memref<1x16xf32, #tpu.memory_space<vmem>>, vector<1x16xf32>
    %7 = vector.broadcast %6 : vector<1x16xf32> to vector<16x16xf32>
    %8 = arith.addf %5, %7 : vector<16x16xf32>
    %9 = tpu.iota {dimensions = array<i32: 1>} : vector<2x8xi32>
    %c1_i32 = arith.constant 1 : i32
    %10 = vector.broadcast %c1_i32 : i32 to vector<2x1xi32>
    %11 = arith.subi %1, %10 : vector<2x1xi32>
    %12 = vector.broadcast %11 : vector<2x1xi32> to vector<2x8xi32>
    %13 = arith.cmpi eq, %9, %12 : vector<2x8xi32>
    %14 = vector.extract_strided_slice %2 {offsets = [0, 0], sizes = [1, 16], strides = [1, 1]} : vector<4x16xf32> to vector<1x16xf32>
    %15 = vector.extract_strided_slice %2 {offsets = [1, 0], sizes = [1, 16], strides = [1, 1]} : vector<4x16xf32> to vector<1x16xf32>
    %16 = vector.extract_strided_slice %2 {offsets = [2, 0], sizes = [1, 16], strides = [1, 1]} : vector<4x16xf32> to vector<1x16xf32>
    %17 = vector.extract_strided_slice %2 {offsets = [3, 0], sizes = [1, 16], strides = [1, 1]} : vector<4x16xf32> to vector<1x16xf32>
    %cst_11 = arith.constant 0.000000e+00 : f32
    %18 = vector.broadcast %cst_11 : f32 to vector<2x4xf32>
    %cst_12 = arith.constant 0.000000e+00 : f32
    %19 = vector.broadcast %cst_12 : f32 to vector<2x4xf32>
    %cst_13 = arith.constant 0.000000e+00 : f32
    %20 = vector.broadcast %cst_13 : f32 to vector<2x4xf32>
    %21 = vector.extract_strided_slice %8 {offsets = [0, 0], sizes = [2, 16], strides = [1, 1]} : vector<16x16xf32> to vector<2x16xf32>
    %22 = vector.extract_strided_slice %18 {offsets = [0, 0], sizes = [2, 1], strides = [1, 1]} : vector<2x4xf32> to vector<2x1xf32>
    %23 = vector.broadcast %22 : vector<2x1xf32> to vector<2x16xf32>
    %24 = vector.broadcast %14 : vector<1x16xf32> to vector<2x16xf32>
    %25 = arith.mulf %23, %24 : vector<2x16xf32>
    %26 = vector.extract_strided_slice %18 {offsets = [0, 1], sizes = [2, 1], strides = [1, 1]} : vector<2x4xf32> to vector<2x1xf32>
    %27 = vector.broadcast %26 : vector<2x1xf32> to vector<2x16xf32>
    %28 = vector.broadcast %15 : vector<1x16xf32> to vector<2x16xf32>
    %29 = arith.mulf %27, %28 : vector<2x16xf32>
    %30 = arith.addf %25, %29 : vector<2x16xf32>
    %31 = vector.extract_strided_slice %18 {offsets = [0, 2], sizes = [2, 1], strides = [1, 1]} : vector<2x4xf32> to vector<2x1xf32>
    %32 = vector.broadcast %31 : vector<2x1xf32> to vector<2x16xf32>
    %33 = vector.broadcast %16 : vector<1x16xf32> to vector<2x16xf32>
    %34 = arith.mulf %32, %33 : vector<2x16xf32>
    %35 = arith.addf %30, %34 : vector<2x16xf32>
    %36 = vector.extract_strided_slice %18 {offsets = [0, 3], sizes = [2, 1], strides = [1, 1]} : vector<2x4xf32> to vector<2x1xf32>
    %37 = vector.broadcast %36 : vector<2x1xf32> to vector<2x16xf32>
    %38 = vector.broadcast %17 : vector<1x16xf32> to vector<2x16xf32>
    %39 = arith.mulf %37, %38 : vector<2x16xf32>
    %40 = arith.addf %35, %39 : vector<2x16xf32>
    %41 = arith.addf %21, %40 : vector<2x16xf32>
    %42 = vector.extract_strided_slice %41 {offsets = [0, 0], sizes = [2, 4], strides = [1, 1]} : vector<2x16xf32> to vector<2x4xf32>
    %43 = arith.negf %42 : vector<2x4xf32>
    %44 = math.exp %43 : vector<2x4xf32>
    %cst_14 = arith.constant 1.000000e+00 : f32
    %45 = vector.broadcast %cst_14 : f32 to vector<2x4xf32>
    %46 = arith.addf %45, %44 : vector<2x4xf32>
    %47 = arith.divf %45, %46 : vector<2x4xf32>
    %48 = vector.extract_strided_slice %41 {offsets = [0, 4], sizes = [2, 4], strides = [1, 1]} : vector<2x16xf32> to vector<2x4xf32>
    %49 = arith.negf %48 : vector<2x4xf32>
    %50 = math.exp %49 : vector<2x4xf32>
    %cst_15 = arith.constant 1.000000e+00 : f32
    %51 = vector.broadcast %cst_15 : f32 to vector<2x4xf32>
    %52 = arith.addf %51, %50 : vector<2x4xf32>
    %53 = arith.divf %51, %52 : vector<2x4xf32>
    %54 = vector.extract_strided_slice %41 {offsets = [0, 8], sizes = [2, 4], strides = [1, 1]} : vector<2x16xf32> to vector<2x4xf32>
    %55 = math.tanh %54 : vector<2x4xf32>
    %56 = vector.extract_strided_slice %41 {offsets = [0, 12], sizes = [2, 4], strides = [1, 1]} : vector<2x16xf32> to vector<2x4xf32>
    %57 = arith.negf %56 : vector<2x4xf32>
    %58 = math.exp %57 : vector<2x4xf32>
    %cst_16 = arith.constant 1.000000e+00 : f32
    %59 = vector.broadcast %cst_16 : f32 to vector<2x4xf32>
    %60 = arith.addf %59, %58 : vector<2x4xf32>
    %61 = arith.divf %59, %60 : vector<2x4xf32>
    %62 = arith.mulf %53, %19 : vector<2x4xf32>
    %63 = arith.mulf %47, %55 : vector<2x4xf32>
    %64 = arith.addf %62, %63 : vector<2x4xf32>
    %65 = math.tanh %64 : vector<2x4xf32>
    %66 = arith.mulf %61, %65 : vector<2x4xf32>
    %67 = vector.extract_strided_slice %13 {offsets = [0, 0], sizes = [2, 1], strides = [1, 1]} : vector<2x8xi1> to vector<2x1xi1>
    %68 = vector.shape_cast %67 : vector<2x1xi1> to vector<2x1xi1>
    %69 = vector.broadcast %68 : vector<2x1xi1> to vector<2x4xi1>
    %70 = arith.select %69, %66, %20 : vector<2x4xi1>, vector<2x4xf32>
    %71 = vector.extract_strided_slice %8 {offsets = [2, 0], sizes = [2, 16], strides = [1, 1]} : vector<16x16xf32> to vector<2x16xf32>
    %72 = vector.extract_strided_slice %66 {offsets = [0, 0], sizes = [2, 1], strides = [1, 1]} : vector<2x4xf32> to vector<2x1xf32>
    %73 = vector.broadcast %72 : vector<2x1xf32> to vector<2x16xf32>
    %74 = vector.broadcast %14 : vector<1x16xf32> to vector<2x16xf32>
    %75 = arith.mulf %73, %74 : vector<2x16xf32>
    %76 = vector.extract_strided_slice %66 {offsets = [0, 1], sizes = [2, 1], strides = [1, 1]} : vector<2x4xf32> to vector<2x1xf32>
    %77 = vector.broadcast %76 : vector<2x1xf32> to vector<2x16xf32>
    %78 = vector.broadcast %15 : vector<1x16xf32> to vector<2x16xf32>
    %79 = arith.mulf %77, %78 : vector<2x16xf32>
    %80 = arith.addf %75, %79 : vector<2x16xf32>
    %81 = vector.extract_strided_slice %66 {offsets = [0, 2], sizes = [2, 1], strides = [1, 1]} : vector<2x4xf32> to vector<2x1xf32>
    %82 = vector.broadcast %81 : vector<2x1xf32> to vector<2x16xf32>
    %83 = vector.broadcast %16 : vector<1x16xf32> to vector<2x16xf32>
    %84 = arith.mulf %82, %83 : vector<2x16xf32>
    %85 = arith.addf %80, %84 : vector<2x16xf32>
    %86 = vector.extract_strided_slice %66 {offsets = [0, 3], sizes = [2, 1], strides = [1, 1]} : vector<2x4xf32> to vector<2x1xf32>
    %87 = vector.broadcast %86 : vector<2x1xf32> to vector<2x16xf32>
    %88 = vector.broadcast %17 : vector<1x16xf32> to vector<2x16xf32>
    %89 = arith.mulf %87, %88 : vector<2x16xf32>
    %90 = arith.addf %85, %89 : vector<2x16xf32>
    %91 = arith.addf %71, %90 : vector<2x16xf32>
    %92 = vector.extract_strided_slice %91 {offsets = [0, 0], sizes = [2, 4], strides = [1, 1]} : vector<2x16xf32> to vector<2x4xf32>
    %93 = arith.negf %92 : vector<2x4xf32>
    %94 = math.exp %93 : vector<2x4xf32>
    %cst_17 = arith.constant 1.000000e+00 : f32
    %95 = vector.broadcast %cst_17 : f32 to vector<2x4xf32>
    %96 = arith.addf %95, %94 : vector<2x4xf32>
    %97 = arith.divf %95, %96 : vector<2x4xf32>
    %98 = vector.extract_strided_slice %91 {offsets = [0, 4], sizes = [2, 4], strides = [1, 1]} : vector<2x16xf32> to vector<2x4xf32>
    %99 = arith.negf %98 : vector<2x4xf32>
    %100 = math.exp %99 : vector<2x4xf32>
    %cst_18 = arith.constant 1.000000e+00 : f32
    %101 = vector.broadcast %cst_18 : f32 to vector<2x4xf32>
    %102 = arith.addf %101, %100 : vector<2x4xf32>
    %103 = arith.divf %101, %102 : vector<2x4xf32>
    %104 = vector.extract_strided_slice %91 {offsets = [0, 8], sizes = [2, 4], strides = [1, 1]} : vector<2x16xf32> to vector<2x4xf32>
    %105 = math.tanh %104 : vector<2x4xf32>
    %106 = vector.extract_strided_slice %91 {offsets = [0, 12], sizes = [2, 4], strides = [1, 1]} : vector<2x16xf32> to vector<2x4xf32>
    %107 = arith.negf %106 : vector<2x4xf32>
    %108 = math.exp %107 : vector<2x4xf32>
    %cst_19 = arith.constant 1.000000e+00 : f32
    %109 = vector.broadcast %cst_19 : f32 to vector<2x4xf32>
    %110 = arith.addf %109, %108 : vector<2x4xf32>
    %111 = arith.divf %109, %110 : vector<2x4xf32>
    %112 = arith.mulf %103, %64 : vector<2x4xf32>
    %113 = arith.mulf %97, %105 : vector<2x4xf32>
    %114 = arith.addf %112, %113 : vector<2x4xf32>
    %115 = math.tanh %114 : vector<2x4xf32>
    %116 = arith.mulf %111, %115 : vector<2x4xf32>
    %117 = vector.extract_strided_slice %13 {offsets = [0, 1], sizes = [2, 1], strides = [1, 1]} : vector<2x8xi1> to vector<2x1xi1>
    %118 = vector.shape_cast %117 : vector<2x1xi1> to vector<2x1xi1>
    %119 = vector.broadcast %118 : vector<2x1xi1> to vector<2x4xi1>
    %120 = arith.select %119, %116, %70 : vector<2x4xi1>, vector<2x4xf32>
    %121 = vector.extract_strided_slice %8 {offsets = [4, 0], sizes = [2, 16], strides = [1, 1]} : vector<16x16xf32> to vector<2x16xf32>
    %122 = vector.extract_strided_slice %116 {offsets = [0, 0], sizes = [2, 1], strides = [1, 1]} : vector<2x4xf32> to vector<2x1xf32>
    %123 = vector.broadcast %122 : vector<2x1xf32> to vector<2x16xf32>
    %124 = vector.broadcast %14 : vector<1x16xf32> to vector<2x16xf32>
    %125 = arith.mulf %123, %124 : vector<2x16xf32>
    %126 = vector.extract_strided_slice %116 {offsets = [0, 1], sizes = [2, 1], strides = [1, 1]} : vector<2x4xf32> to vector<2x1xf32>
    %127 = vector.broadcast %126 : vector<2x1xf32> to vector<2x16xf32>
    %128 = vector.broadcast %15 : vector<1x16xf32> to vector<2x16xf32>
    %129 = arith.mulf %127, %128 : vector<2x16xf32>
    %130 = arith.addf %125, %129 : vector<2x16xf32>
    %131 = vector.extract_strided_slice %116 {offsets = [0, 2], sizes = [2, 1], strides = [1, 1]} : vector<2x4xf32> to vector<2x1xf32>
    %132 = vector.broadcast %131 : vector<2x1xf32> to vector<2x16xf32>
    %133 = vector.broadcast %16 : vector<1x16xf32> to vector<2x16xf32>
    %134 = arith.mulf %132, %133 : vector<2x16xf32>
    %135 = arith.addf %130, %134 : vector<2x16xf32>
    %136 = vector.extract_strided_slice %116 {offsets = [0, 3], sizes = [2, 1], strides = [1, 1]} : vector<2x4xf32> to vector<2x1xf32>
    %137 = vector.broadcast %136 : vector<2x1xf32> to vector<2x16xf32>
    %138 = vector.broadcast %17 : vector<1x16xf32> to vector<2x16xf32>
    %139 = arith.mulf %137, %138 : vector<2x16xf32>
    %140 = arith.addf %135, %139 : vector<2x16xf32>
    %141 = arith.addf %121, %140 : vector<2x16xf32>
    %142 = vector.extract_strided_slice %141 {offsets = [0, 0], sizes = [2, 4], strides = [1, 1]} : vector<2x16xf32> to vector<2x4xf32>
    %143 = arith.negf %142 : vector<2x4xf32>
    %144 = math.exp %143 : vector<2x4xf32>
    %cst_20 = arith.constant 1.000000e+00 : f32
    %145 = vector.broadcast %cst_20 : f32 to vector<2x4xf32>
    %146 = arith.addf %145, %144 : vector<2x4xf32>
    %147 = arith.divf %145, %146 : vector<2x4xf32>
    %148 = vector.extract_strided_slice %141 {offsets = [0, 4], sizes = [2, 4], strides = [1, 1]} : vector<2x16xf32> to vector<2x4xf32>
    %149 = arith.negf %148 : vector<2x4xf32>
    %150 = math.exp %149 : vector<2x4xf32>
    %cst_21 = arith.constant 1.000000e+00 : f32
    %151 = vector.broadcast %cst_21 : f32 to vector<2x4xf32>
    %152 = arith.addf %151, %150 : vector<2x4xf32>
    %153 = arith.divf %151, %152 : vector<2x4xf32>
    %154 = vector.extract_strided_slice %141 {offsets = [0, 8], sizes = [2, 4], strides = [1, 1]} : vector<2x16xf32> to vector<2x4xf32>
    %155 = math.tanh %154 : vector<2x4xf32>
    %156 = vector.extract_strided_slice %141 {offsets = [0, 12], sizes = [2, 4], strides = [1, 1]} : vector<2x16xf32> to vector<2x4xf32>
    %157 = arith.negf %156 : vector<2x4xf32>
    %158 = math.exp %157 : vector<2x4xf32>
    %cst_22 = arith.constant 1.000000e+00 : f32
    %159 = vector.broadcast %cst_22 : f32 to vector<2x4xf32>
    %160 = arith.addf %159, %158 : vector<2x4xf32>
    %161 = arith.divf %159, %160 : vector<2x4xf32>
    %162 = arith.mulf %153, %114 : vector<2x4xf32>
    %163 = arith.mulf %147, %155 : vector<2x4xf32>
    %164 = arith.addf %162, %163 : vector<2x4xf32>
    %165 = math.tanh %164 : vector<2x4xf32>
    %166 = arith.mulf %161, %165 : vector<2x4xf32>
    %167 = vector.extract_strided_slice %13 {offsets = [0, 2], sizes = [2, 1], strides = [1, 1]} : vector<2x8xi1> to vector<2x1xi1>
    %168 = vector.shape_cast %167 : vector<2x1xi1> to vector<2x1xi1>
    %169 = vector.broadcast %168 : vector<2x1xi1> to vector<2x4xi1>
    %170 = arith.select %169, %166, %120 : vector<2x4xi1>, vector<2x4xf32>
    %171 = vector.extract_strided_slice %8 {offsets = [6, 0], sizes = [2, 16], strides = [1, 1]} : vector<16x16xf32> to vector<2x16xf32>
    %172 = vector.extract_strided_slice %166 {offsets = [0, 0], sizes = [2, 1], strides = [1, 1]} : vector<2x4xf32> to vector<2x1xf32>
    %173 = vector.broadcast %172 : vector<2x1xf32> to vector<2x16xf32>
    %174 = vector.broadcast %14 : vector<1x16xf32> to vector<2x16xf32>
    %175 = arith.mulf %173, %174 : vector<2x16xf32>
    %176 = vector.extract_strided_slice %166 {offsets = [0, 1], sizes = [2, 1], strides = [1, 1]} : vector<2x4xf32> to vector<2x1xf32>
    %177 = vector.broadcast %176 : vector<2x1xf32> to vector<2x16xf32>
    %178 = vector.broadcast %15 : vector<1x16xf32> to vector<2x16xf32>
    %179 = arith.mulf %177, %178 : vector<2x16xf32>
    %180 = arith.addf %175, %179 : vector<2x16xf32>
    %181 = vector.extract_strided_slice %166 {offsets = [0, 2], sizes = [2, 1], strides = [1, 1]} : vector<2x4xf32> to vector<2x1xf32>
    %182 = vector.broadcast %181 : vector<2x1xf32> to vector<2x16xf32>
    %183 = vector.broadcast %16 : vector<1x16xf32> to vector<2x16xf32>
    %184 = arith.mulf %182, %183 : vector<2x16xf32>
    %185 = arith.addf %180, %184 : vector<2x16xf32>
    %186 = vector.extract_strided_slice %166 {offsets = [0, 3], sizes = [2, 1], strides = [1, 1]} : vector<2x4xf32> to vector<2x1xf32>
    %187 = vector.broadcast %186 : vector<2x1xf32> to vector<2x16xf32>
    %188 = vector.broadcast %17 : vector<1x16xf32> to vector<2x16xf32>
    %189 = arith.mulf %187, %188 : vector<2x16xf32>
    %190 = arith.addf %185, %189 : vector<2x16xf32>
    %191 = arith.addf %171, %190 : vector<2x16xf32>
    %192 = vector.extract_strided_slice %191 {offsets = [0, 0], sizes = [2, 4], strides = [1, 1]} : vector<2x16xf32> to vector<2x4xf32>
    %193 = arith.negf %192 : vector<2x4xf32>
    %194 = math.exp %193 : vector<2x4xf32>
    %cst_23 = arith.constant 1.000000e+00 : f32
    %195 = vector.broadcast %cst_23 : f32 to vector<2x4xf32>
    %196 = arith.addf %195, %194 : vector<2x4xf32>
    %197 = arith.divf %195, %196 : vector<2x4xf32>
    %198 = vector.extract_strided_slice %191 {offsets = [0, 4], sizes = [2, 4], strides = [1, 1]} : vector<2x16xf32> to vector<2x4xf32>
    %199 = arith.negf %198 : vector<2x4xf32>
    %200 = math.exp %199 : vector<2x4xf32>
    %cst_24 = arith.constant 1.000000e+00 : f32
    %201 = vector.broadcast %cst_24 : f32 to vector<2x4xf32>
    %202 = arith.addf %201, %200 : vector<2x4xf32>
    %203 = arith.divf %201, %202 : vector<2x4xf32>
    %204 = vector.extract_strided_slice %191 {offsets = [0, 8], sizes = [2, 4], strides = [1, 1]} : vector<2x16xf32> to vector<2x4xf32>
    %205 = math.tanh %204 : vector<2x4xf32>
    %206 = vector.extract_strided_slice %191 {offsets = [0, 12], sizes = [2, 4], strides = [1, 1]} : vector<2x16xf32> to vector<2x4xf32>
    %207 = arith.negf %206 : vector<2x4xf32>
    %208 = math.exp %207 : vector<2x4xf32>
    %cst_25 = arith.constant 1.000000e+00 : f32
    %209 = vector.broadcast %cst_25 : f32 to vector<2x4xf32>
    %210 = arith.addf %209, %208 : vector<2x4xf32>
    %211 = arith.divf %209, %210 : vector<2x4xf32>
    %212 = arith.mulf %203, %164 : vector<2x4xf32>
    %213 = arith.mulf %197, %205 : vector<2x4xf32>
    %214 = arith.addf %212, %213 : vector<2x4xf32>
    %215 = math.tanh %214 : vector<2x4xf32>
    %216 = arith.mulf %211, %215 : vector<2x4xf32>
    %217 = vector.extract_strided_slice %13 {offsets = [0, 3], sizes = [2, 1], strides = [1, 1]} : vector<2x8xi1> to vector<2x1xi1>
    %218 = vector.shape_cast %217 : vector<2x1xi1> to vector<2x1xi1>
    %219 = vector.broadcast %218 : vector<2x1xi1> to vector<2x4xi1>
    %220 = arith.select %219, %216, %170 : vector<2x4xi1>, vector<2x4xf32>
    %221 = vector.extract_strided_slice %8 {offsets = [8, 0], sizes = [2, 16], strides = [1, 1]} : vector<16x16xf32> to vector<2x16xf32>
    %222 = vector.extract_strided_slice %216 {offsets = [0, 0], sizes = [2, 1], strides = [1, 1]} : vector<2x4xf32> to vector<2x1xf32>
    %223 = vector.broadcast %222 : vector<2x1xf32> to vector<2x16xf32>
    %224 = vector.broadcast %14 : vector<1x16xf32> to vector<2x16xf32>
    %225 = arith.mulf %223, %224 : vector<2x16xf32>
    %226 = vector.extract_strided_slice %216 {offsets = [0, 1], sizes = [2, 1], strides = [1, 1]} : vector<2x4xf32> to vector<2x1xf32>
    %227 = vector.broadcast %226 : vector<2x1xf32> to vector<2x16xf32>
    %228 = vector.broadcast %15 : vector<1x16xf32> to vector<2x16xf32>
    %229 = arith.mulf %227, %228 : vector<2x16xf32>
    %230 = arith.addf %225, %229 : vector<2x16xf32>
    %231 = vector.extract_strided_slice %216 {offsets = [0, 2], sizes = [2, 1], strides = [1, 1]} : vector<2x4xf32> to vector<2x1xf32>
    %232 = vector.broadcast %231 : vector<2x1xf32> to vector<2x16xf32>
    %233 = vector.broadcast %16 : vector<1x16xf32> to vector<2x16xf32>
    %234 = arith.mulf %232, %233 : vector<2x16xf32>
    %235 = arith.addf %230, %234 : vector<2x16xf32>
    %236 = vector.extract_strided_slice %216 {offsets = [0, 3], sizes = [2, 1], strides = [1, 1]} : vector<2x4xf32> to vector<2x1xf32>
    %237 = vector.broadcast %236 : vector<2x1xf32> to vector<2x16xf32>
    %238 = vector.broadcast %17 : vector<1x16xf32> to vector<2x16xf32>
    %239 = arith.mulf %237, %238 : vector<2x16xf32>
    %240 = arith.addf %235, %239 : vector<2x16xf32>
    %241 = arith.addf %221, %240 : vector<2x16xf32>
    %242 = vector.extract_strided_slice %241 {offsets = [0, 0], sizes = [2, 4], strides = [1, 1]} : vector<2x16xf32> to vector<2x4xf32>
    %243 = arith.negf %242 : vector<2x4xf32>
    %244 = math.exp %243 : vector<2x4xf32>
    %cst_26 = arith.constant 1.000000e+00 : f32
    %245 = vector.broadcast %cst_26 : f32 to vector<2x4xf32>
    %246 = arith.addf %245, %244 : vector<2x4xf32>
    %247 = arith.divf %245, %246 : vector<2x4xf32>
    %248 = vector.extract_strided_slice %241 {offsets = [0, 4], sizes = [2, 4], strides = [1, 1]} : vector<2x16xf32> to vector<2x4xf32>
    %249 = arith.negf %248 : vector<2x4xf32>
    %250 = math.exp %249 : vector<2x4xf32>
    %cst_27 = arith.constant 1.000000e+00 : f32
    %251 = vector.broadcast %cst_27 : f32 to vector<2x4xf32>
    %252 = arith.addf %251, %250 : vector<2x4xf32>
    %253 = arith.divf %251, %252 : vector<2x4xf32>
    %254 = vector.extract_strided_slice %241 {offsets = [0, 8], sizes = [2, 4], strides = [1, 1]} : vector<2x16xf32> to vector<2x4xf32>
    %255 = math.tanh %254 : vector<2x4xf32>
    %256 = vector.extract_strided_slice %241 {offsets = [0, 12], sizes = [2, 4], strides = [1, 1]} : vector<2x16xf32> to vector<2x4xf32>
    %257 = arith.negf %256 : vector<2x4xf32>
    %258 = math.exp %257 : vector<2x4xf32>
    %cst_28 = arith.constant 1.000000e+00 : f32
    %259 = vector.broadcast %cst_28 : f32 to vector<2x4xf32>
    %260 = arith.addf %259, %258 : vector<2x4xf32>
    %261 = arith.divf %259, %260 : vector<2x4xf32>
    %262 = arith.mulf %253, %214 : vector<2x4xf32>
    %263 = arith.mulf %247, %255 : vector<2x4xf32>
    %264 = arith.addf %262, %263 : vector<2x4xf32>
    %265 = math.tanh %264 : vector<2x4xf32>
    %266 = arith.mulf %261, %265 : vector<2x4xf32>
    %267 = vector.extract_strided_slice %13 {offsets = [0, 4], sizes = [2, 1], strides = [1, 1]} : vector<2x8xi1> to vector<2x1xi1>
    %268 = vector.shape_cast %267 : vector<2x1xi1> to vector<2x1xi1>
    %269 = vector.broadcast %268 : vector<2x1xi1> to vector<2x4xi1>
    %270 = arith.select %269, %266, %220 : vector<2x4xi1>, vector<2x4xf32>
    %271 = vector.extract_strided_slice %8 {offsets = [10, 0], sizes = [2, 16], strides = [1, 1]} : vector<16x16xf32> to vector<2x16xf32>
    %272 = vector.extract_strided_slice %266 {offsets = [0, 0], sizes = [2, 1], strides = [1, 1]} : vector<2x4xf32> to vector<2x1xf32>
    %273 = vector.broadcast %272 : vector<2x1xf32> to vector<2x16xf32>
    %274 = vector.broadcast %14 : vector<1x16xf32> to vector<2x16xf32>
    %275 = arith.mulf %273, %274 : vector<2x16xf32>
    %276 = vector.extract_strided_slice %266 {offsets = [0, 1], sizes = [2, 1], strides = [1, 1]} : vector<2x4xf32> to vector<2x1xf32>
    %277 = vector.broadcast %276 : vector<2x1xf32> to vector<2x16xf32>
    %278 = vector.broadcast %15 : vector<1x16xf32> to vector<2x16xf32>
    %279 = arith.mulf %277, %278 : vector<2x16xf32>
    %280 = arith.addf %275, %279 : vector<2x16xf32>
    %281 = vector.extract_strided_slice %266 {offsets = [0, 2], sizes = [2, 1], strides = [1, 1]} : vector<2x4xf32> to vector<2x1xf32>
    %282 = vector.broadcast %281 : vector<2x1xf32> to vector<2x16xf32>
    %283 = vector.broadcast %16 : vector<1x16xf32> to vector<2x16xf32>
    %284 = arith.mulf %282, %283 : vector<2x16xf32>
    %285 = arith.addf %280, %284 : vector<2x16xf32>
    %286 = vector.extract_strided_slice %266 {offsets = [0, 3], sizes = [2, 1], strides = [1, 1]} : vector<2x4xf32> to vector<2x1xf32>
    %287 = vector.broadcast %286 : vector<2x1xf32> to vector<2x16xf32>
    %288 = vector.broadcast %17 : vector<1x16xf32> to vector<2x16xf32>
    %289 = arith.mulf %287, %288 : vector<2x16xf32>
    %290 = arith.addf %285, %289 : vector<2x16xf32>
    %291 = arith.addf %271, %290 : vector<2x16xf32>
    %292 = vector.extract_strided_slice %291 {offsets = [0, 0], sizes = [2, 4], strides = [1, 1]} : vector<2x16xf32> to vector<2x4xf32>
    %293 = arith.negf %292 : vector<2x4xf32>
    %294 = math.exp %293 : vector<2x4xf32>
    %cst_29 = arith.constant 1.000000e+00 : f32
    %295 = vector.broadcast %cst_29 : f32 to vector<2x4xf32>
    %296 = arith.addf %295, %294 : vector<2x4xf32>
    %297 = arith.divf %295, %296 : vector<2x4xf32>
    %298 = vector.extract_strided_slice %291 {offsets = [0, 4], sizes = [2, 4], strides = [1, 1]} : vector<2x16xf32> to vector<2x4xf32>
    %299 = arith.negf %298 : vector<2x4xf32>
    %300 = math.exp %299 : vector<2x4xf32>
    %cst_30 = arith.constant 1.000000e+00 : f32
    %301 = vector.broadcast %cst_30 : f32 to vector<2x4xf32>
    %302 = arith.addf %301, %300 : vector<2x4xf32>
    %303 = arith.divf %301, %302 : vector<2x4xf32>
    %304 = vector.extract_strided_slice %291 {offsets = [0, 8], sizes = [2, 4], strides = [1, 1]} : vector<2x16xf32> to vector<2x4xf32>
    %305 = math.tanh %304 : vector<2x4xf32>
    %306 = vector.extract_strided_slice %291 {offsets = [0, 12], sizes = [2, 4], strides = [1, 1]} : vector<2x16xf32> to vector<2x4xf32>
    %307 = arith.negf %306 : vector<2x4xf32>
    %308 = math.exp %307 : vector<2x4xf32>
    %cst_31 = arith.constant 1.000000e+00 : f32
    %309 = vector.broadcast %cst_31 : f32 to vector<2x4xf32>
    %310 = arith.addf %309, %308 : vector<2x4xf32>
    %311 = arith.divf %309, %310 : vector<2x4xf32>
    %312 = arith.mulf %303, %264 : vector<2x4xf32>
    %313 = arith.mulf %297, %305 : vector<2x4xf32>
    %314 = arith.addf %312, %313 : vector<2x4xf32>
    %315 = math.tanh %314 : vector<2x4xf32>
    %316 = arith.mulf %311, %315 : vector<2x4xf32>
    %317 = vector.extract_strided_slice %13 {offsets = [0, 5], sizes = [2, 1], strides = [1, 1]} : vector<2x8xi1> to vector<2x1xi1>
    %318 = vector.shape_cast %317 : vector<2x1xi1> to vector<2x1xi1>
    %319 = vector.broadcast %318 : vector<2x1xi1> to vector<2x4xi1>
    %320 = arith.select %319, %316, %270 : vector<2x4xi1>, vector<2x4xf32>
    %321 = vector.extract_strided_slice %8 {offsets = [12, 0], sizes = [2, 16], strides = [1, 1]} : vector<16x16xf32> to vector<2x16xf32>
    %322 = vector.extract_strided_slice %316 {offsets = [0, 0], sizes = [2, 1], strides = [1, 1]} : vector<2x4xf32> to vector<2x1xf32>
    %323 = vector.broadcast %322 : vector<2x1xf32> to vector<2x16xf32>
    %324 = vector.broadcast %14 : vector<1x16xf32> to vector<2x16xf32>
    %325 = arith.mulf %323, %324 : vector<2x16xf32>
    %326 = vector.extract_strided_slice %316 {offsets = [0, 1], sizes = [2, 1], strides = [1, 1]} : vector<2x4xf32> to vector<2x1xf32>
    %327 = vector.broadcast %326 : vector<2x1xf32> to vector<2x16xf32>
    %328 = vector.broadcast %15 : vector<1x16xf32> to vector<2x16xf32>
    %329 = arith.mulf %327, %328 : vector<2x16xf32>
    %330 = arith.addf %325, %329 : vector<2x16xf32>
    %331 = vector.extract_strided_slice %316 {offsets = [0, 2], sizes = [2, 1], strides = [1, 1]} : vector<2x4xf32> to vector<2x1xf32>
    %332 = vector.broadcast %331 : vector<2x1xf32> to vector<2x16xf32>
    %333 = vector.broadcast %16 : vector<1x16xf32> to vector<2x16xf32>
    %334 = arith.mulf %332, %333 : vector<2x16xf32>
    %335 = arith.addf %330, %334 : vector<2x16xf32>
    %336 = vector.extract_strided_slice %316 {offsets = [0, 3], sizes = [2, 1], strides = [1, 1]} : vector<2x4xf32> to vector<2x1xf32>
    %337 = vector.broadcast %336 : vector<2x1xf32> to vector<2x16xf32>
    %338 = vector.broadcast %17 : vector<1x16xf32> to vector<2x16xf32>
    %339 = arith.mulf %337, %338 : vector<2x16xf32>
    %340 = arith.addf %335, %339 : vector<2x16xf32>
    %341 = arith.addf %321, %340 : vector<2x16xf32>
    %342 = vector.extract_strided_slice %341 {offsets = [0, 0], sizes = [2, 4], strides = [1, 1]} : vector<2x16xf32> to vector<2x4xf32>
    %343 = arith.negf %342 : vector<2x4xf32>
    %344 = math.exp %343 : vector<2x4xf32>
    %cst_32 = arith.constant 1.000000e+00 : f32
    %345 = vector.broadcast %cst_32 : f32 to vector<2x4xf32>
    %346 = arith.addf %345, %344 : vector<2x4xf32>
    %347 = arith.divf %345, %346 : vector<2x4xf32>
    %348 = vector.extract_strided_slice %341 {offsets = [0, 4], sizes = [2, 4], strides = [1, 1]} : vector<2x16xf32> to vector<2x4xf32>
    %349 = arith.negf %348 : vector<2x4xf32>
    %350 = math.exp %349 : vector<2x4xf32>
    %cst_33 = arith.constant 1.000000e+00 : f32
    %351 = vector.broadcast %cst_33 : f32 to vector<2x4xf32>
    %352 = arith.addf %351, %350 : vector<2x4xf32>
    %353 = arith.divf %351, %352 : vector<2x4xf32>
    %354 = vector.extract_strided_slice %341 {offsets = [0, 8], sizes = [2, 4], strides = [1, 1]} : vector<2x16xf32> to vector<2x4xf32>
    %355 = math.tanh %354 : vector<2x4xf32>
    %356 = vector.extract_strided_slice %341 {offsets = [0, 12], sizes = [2, 4], strides = [1, 1]} : vector<2x16xf32> to vector<2x4xf32>
    %357 = arith.negf %356 : vector<2x4xf32>
    %358 = math.exp %357 : vector<2x4xf32>
    %cst_34 = arith.constant 1.000000e+00 : f32
    %359 = vector.broadcast %cst_34 : f32 to vector<2x4xf32>
    %360 = arith.addf %359, %358 : vector<2x4xf32>
    %361 = arith.divf %359, %360 : vector<2x4xf32>
    %362 = arith.mulf %353, %314 : vector<2x4xf32>
    %363 = arith.mulf %347, %355 : vector<2x4xf32>
    %364 = arith.addf %362, %363 : vector<2x4xf32>
    %365 = math.tanh %364 : vector<2x4xf32>
    %366 = arith.mulf %361, %365 : vector<2x4xf32>
    %367 = vector.extract_strided_slice %13 {offsets = [0, 6], sizes = [2, 1], strides = [1, 1]} : vector<2x8xi1> to vector<2x1xi1>
    %368 = vector.shape_cast %367 : vector<2x1xi1> to vector<2x1xi1>
    %369 = vector.broadcast %368 : vector<2x1xi1> to vector<2x4xi1>
    %370 = arith.select %369, %366, %320 : vector<2x4xi1>, vector<2x4xf32>
    %371 = vector.extract_strided_slice %8 {offsets = [14, 0], sizes = [2, 16], strides = [1, 1]} : vector<16x16xf32> to vector<2x16xf32>
    %372 = vector.extract_strided_slice %366 {offsets = [0, 0], sizes = [2, 1], strides = [1, 1]} : vector<2x4xf32> to vector<2x1xf32>
    %373 = vector.broadcast %372 : vector<2x1xf32> to vector<2x16xf32>
    %374 = vector.broadcast %14 : vector<1x16xf32> to vector<2x16xf32>
    %375 = arith.mulf %373, %374 : vector<2x16xf32>
    %376 = vector.extract_strided_slice %366 {offsets = [0, 1], sizes = [2, 1], strides = [1, 1]} : vector<2x4xf32> to vector<2x1xf32>
    %377 = vector.broadcast %376 : vector<2x1xf32> to vector<2x16xf32>
    %378 = vector.broadcast %15 : vector<1x16xf32> to vector<2x16xf32>
    %379 = arith.mulf %377, %378 : vector<2x16xf32>
    %380 = arith.addf %375, %379 : vector<2x16xf32>
    %381 = vector.extract_strided_slice %366 {offsets = [0, 2], sizes = [2, 1], strides = [1, 1]} : vector<2x4xf32> to vector<2x1xf32>
    %382 = vector.broadcast %381 : vector<2x1xf32> to vector<2x16xf32>
    %383 = vector.broadcast %16 : vector<1x16xf32> to vector<2x16xf32>
    %384 = arith.mulf %382, %383 : vector<2x16xf32>
    %385 = arith.addf %380, %384 : vector<2x16xf32>
    %386 = vector.extract_strided_slice %366 {offsets = [0, 3], sizes = [2, 1], strides = [1, 1]} : vector<2x4xf32> to vector<2x1xf32>
    %387 = vector.broadcast %386 : vector<2x1xf32> to vector<2x16xf32>
    %388 = vector.broadcast %17 : vector<1x16xf32> to vector<2x16xf32>
    %389 = arith.mulf %387, %388 : vector<2x16xf32>
    %390 = arith.addf %385, %389 : vector<2x16xf32>
    %391 = arith.addf %371, %390 : vector<2x16xf32>
    %392 = vector.extract_strided_slice %391 {offsets = [0, 0], sizes = [2, 4], strides = [1, 1]} : vector<2x16xf32> to vector<2x4xf32>
    %393 = arith.negf %392 : vector<2x4xf32>
    %394 = math.exp %393 : vector<2x4xf32>
    %cst_35 = arith.constant 1.000000e+00 : f32
    %395 = vector.broadcast %cst_35 : f32 to vector<2x4xf32>
    %396 = arith.addf %395, %394 : vector<2x4xf32>
    %397 = arith.divf %395, %396 : vector<2x4xf32>
    %398 = vector.extract_strided_slice %391 {offsets = [0, 4], sizes = [2, 4], strides = [1, 1]} : vector<2x16xf32> to vector<2x4xf32>
    %399 = arith.negf %398 : vector<2x4xf32>
    %400 = math.exp %399 : vector<2x4xf32>
    %cst_36 = arith.constant 1.000000e+00 : f32
    %401 = vector.broadcast %cst_36 : f32 to vector<2x4xf32>
    %402 = arith.addf %401, %400 : vector<2x4xf32>
    %403 = arith.divf %401, %402 : vector<2x4xf32>
    %404 = vector.extract_strided_slice %391 {offsets = [0, 8], sizes = [2, 4], strides = [1, 1]} : vector<2x16xf32> to vector<2x4xf32>
    %405 = math.tanh %404 : vector<2x4xf32>
    %406 = vector.extract_strided_slice %391 {offsets = [0, 12], sizes = [2, 4], strides = [1, 1]} : vector<2x16xf32> to vector<2x4xf32>
    %407 = arith.negf %406 : vector<2x4xf32>
    %408 = math.exp %407 : vector<2x4xf32>
    %cst_37 = arith.constant 1.000000e+00 : f32
    %409 = vector.broadcast %cst_37 : f32 to vector<2x4xf32>
    %410 = arith.addf %409, %408 : vector<2x4xf32>
    %411 = arith.divf %409, %410 : vector<2x4xf32>
    %412 = arith.mulf %403, %364 : vector<2x4xf32>
    %413 = arith.mulf %397, %405 : vector<2x4xf32>
    %414 = arith.addf %412, %413 : vector<2x4xf32>
    %415 = math.tanh %414 : vector<2x4xf32>
    %416 = arith.mulf %411, %415 : vector<2x4xf32>
    %417 = vector.extract_strided_slice %13 {offsets = [0, 7], sizes = [2, 1], strides = [1, 1]} : vector<2x8xi1> to vector<2x1xi1>
    %418 = vector.shape_cast %417 : vector<2x1xi1> to vector<2x1xi1>
    %419 = vector.broadcast %418 : vector<2x1xi1> to vector<2x4xi1>
    %420 = arith.select %419, %416, %370 : vector<2x4xi1>, vector<2x4xf32>
    %c0_38 = arith.constant 0 : index
    %c0_39 = arith.constant 0 : index
    %421 = vector.load %arg6[%c0_38, %c0_39] : memref<1x2xf32, #tpu.memory_space<vmem>>, vector<1x2xf32>
    %422 = vector.shape_cast %421 : vector<1x2xf32> to vector<1x2xf32>
    %423 = vector.broadcast %422 : vector<1x2xf32> to vector<2x2xf32>
    %424 = vector.extract_strided_slice %420 {offsets = [0, 0], sizes = [2, 1], strides = [1, 1]} : vector<2x4xf32> to vector<2x1xf32>
    %425 = vector.extract_strided_slice %3 {offsets = [0, 0], sizes = [1, 2], strides = [1, 1]} : vector<4x2xf32> to vector<1x2xf32>
    %426 = vector.broadcast %424 : vector<2x1xf32> to vector<2x2xf32>
    %427 = vector.broadcast %425 : vector<1x2xf32> to vector<2x2xf32>
    %428 = arith.mulf %426, %427 : vector<2x2xf32>
    %429 = arith.addf %423, %428 : vector<2x2xf32>
    %430 = vector.extract_strided_slice %420 {offsets = [0, 1], sizes = [2, 1], strides = [1, 1]} : vector<2x4xf32> to vector<2x1xf32>
    %431 = vector.extract_strided_slice %3 {offsets = [1, 0], sizes = [1, 2], strides = [1, 1]} : vector<4x2xf32> to vector<1x2xf32>
    %432 = vector.broadcast %430 : vector<2x1xf32> to vector<2x2xf32>
    %433 = vector.broadcast %431 : vector<1x2xf32> to vector<2x2xf32>
    %434 = arith.mulf %432, %433 : vector<2x2xf32>
    %435 = arith.addf %429, %434 : vector<2x2xf32>
    %436 = vector.extract_strided_slice %420 {offsets = [0, 2], sizes = [2, 1], strides = [1, 1]} : vector<2x4xf32> to vector<2x1xf32>
    %437 = vector.extract_strided_slice %3 {offsets = [2, 0], sizes = [1, 2], strides = [1, 1]} : vector<4x2xf32> to vector<1x2xf32>
    %438 = vector.broadcast %436 : vector<2x1xf32> to vector<2x2xf32>
    %439 = vector.broadcast %437 : vector<1x2xf32> to vector<2x2xf32>
    %440 = arith.mulf %438, %439 : vector<2x2xf32>
    %441 = arith.addf %435, %440 : vector<2x2xf32>
    %442 = vector.extract_strided_slice %420 {offsets = [0, 3], sizes = [2, 1], strides = [1, 1]} : vector<2x4xf32> to vector<2x1xf32>
    %443 = vector.extract_strided_slice %3 {offsets = [3, 0], sizes = [1, 2], strides = [1, 1]} : vector<4x2xf32> to vector<1x2xf32>
    %444 = vector.broadcast %442 : vector<2x1xf32> to vector<2x2xf32>
    %445 = vector.broadcast %443 : vector<1x2xf32> to vector<2x2xf32>
    %446 = arith.mulf %444, %445 : vector<2x2xf32>
    %447 = arith.addf %441, %446 : vector<2x2xf32>
    %c0_40 = arith.constant 0 : index
    %c0_41 = arith.constant 0 : index
    %448 = vector.load %arg7[%c0_40, %c0_41] : memref<2x2xf32, #tpu.memory_space<vmem>>, vector<2x2xf32>
    tpu.vector_store %arg7[%c0_40, %c0_41], %447 {strides = array<i32>} : memref<2x2xf32, #tpu.memory_space<vmem>>, vector<2x2xf32>,
    return
  }
}

</mosaic_0001>

<bundles_post_ra>
// kernel: tpu_custom_call.1
= control target key start
LH: loop header
LB: loop body
LE: loop exit
PB: predicated region body
PF: predicated region fallthrough
CT: control target
= control target key end

     0   :  { %12 = vsyncpa [#allocation3], 0  ;;  %s1241_s0 = inlined_call_operand.hbm [shape: f32[16,16], index: 0, kind: input, shape index: {}]   ;;  %s1242_s1 = inlined_call_operand.vmem [shape: s32[2,1], index: 1, kind: input, shape index: {}]   ;;  %s1243_s2 = inlined_call_operand.hbm [shape: f32[16,16], index: 2, kind: input, shape index: {}]   ;;  %s1244_s3 = inlined_call_operand.vmem [shape: f32[4,16], index: 3, kind: input, shape index: {}]   ;;  %s1245_s4 = inlined_call_operand.vmem [shape: f32[1,16], index: 4, kind: input, shape index: {}]   ;;  %s1246_s5 = inlined_call_operand.vmem [shape: f32[4,2], index: 5, kind: input, shape index: {}]   ;;  %s1247_s6 = inlined_call_operand.vmem [shape: f32[1,2], index: 6, kind: input, shape index: {}]   ;;  %s1248_s7 = inlined_call_operand.hbm [shape: f32[2,2], index: 7, kind: output, shape index: {}]  }
   0x1   :  { %13 = vsyncpa [#allocation6], 0 }
   0x2   :  { %14 = vsyncpa [#allocation4], 0  ;;  %s948_s24 = smov [#allocation2]  }
   0x3   :  { %s20_s25 = sshll.u32 %s948_s24, 4  ;;  %s21_s25 = int_to_ptr.vmem [resolvable:$true] %s20_s25 }
   0x4   :  { %s890_s26 = scalar_lea.vmem %s21_s25, 256  ;;  %p895_p1 = scmp.lt.s32.totalorder %s21_s25, %s21_s25 }
   0x5   :  { %p891_p0 = scmp.ne.s32.totalorder %s21_s25, %s890_s26  ;;  %p896_p2 = scmp.lt.s32.totalorder %s890_s26, %s890_s26 }
   0x7   :  { %p897_p3 = por %p896_p2, %p895_p1 }
   0x9   :  { %p898_p4 = pnand %p897_p3, %p891_p0 }
   0xb   :  { %901 = shalt.err (!%p898_p4)
}
   0xc   :  { %s949_s27 = smov 128   ;;  %s950_s28 = smov 8  }
   0xd   :  { %26 = dma.hbm_to_vmem [thread:$0]  %s1241_s0, 256, %s21_s25, [#allocation3], %s949_s27, %s949_s27, %s950_s28  }
   0xe   :  { %s951_s8 = smov [#allocation5]  }
   0xf   :  { %s34_s9 = sshll.u32 %s951_s8, 4  ;;  %s35_s9 = int_to_ptr.vmem [resolvable:$true] %s34_s9 }
  0x10   :  { %s910_s10 = scalar_lea.vmem %s35_s9, 256  ;;  %p915_p6 = scmp.lt.s32.totalorder %s35_s9, %s35_s9 }
  0x11   :  { %p911_p5 = scmp.ne.s32.totalorder %s35_s9, %s910_s10  ;;  %p916_p7 = scmp.lt.s32.totalorder %s910_s10, %s910_s10 }
  0x13   :  { %p917_p8 = por %p916_p7, %p915_p6 }
  0x15   :  { %p918_p9 = pnand %p917_p8, %p911_p5 }
  0x17   :  { %921 = shalt.err (!%p918_p9)
}
  0x18   :  { %40 = dma.hbm_to_vmem [thread:$0]  %s1243_s2, 256, %s35_s9, [#allocation6], %s949_s27, %s949_s27, %s950_s28  }
  0x19   :  { %942 = dma.done.wait [#allocation3], 256  }
  0x1a   :  { %943 = vsyncadd [#allocation3], 4294967040 }
  0x1b   :  { %944 = dma.done.wait [#allocation6], 256  }
  0x1c   :  { %945 = vsyncadd [#allocation6], 4294967040  ;;  %vm69_vm0 = vcmask 130048   ;;  %v61_v0 = vld [vmem:[#allocation5 + $0x8] sm:$0xff]  ;;  %v60_v1 = vld [vmem:[#allocation5] sm:$0xff]  ;;  %v151_v4 = vlaneseq  ;;  %s952_s14 = smov 120  }
  0x1d   :  { %v55_v2 = vld [vmem:[#allocation2] sm:$0xff]  ;;  %752 = vmatprep.subr.mxu0 %v61_v0  ;;  %v56_v3 = vld [vmem:[#allocation2 + $0x8] sm:$0xff]  ;;  %v954_v38 = vmov 13   ;;  %v955_v39 = vmov 12   ;;  %v956_v43 = vmov 14   ;;  %v957_v44 = vmov 15  }
  0x1e   :  { %756 = vmatprep.mubr.msk.f32.mxu0 %vm69_vm0, %v55_v2  ;;  %753 = vmatpush3.msra.mxu0 %v61_v0  ;;  %v1018_v5 = vshrl.u32 %v151_v4, 7  ;;  %v58_v8 = vld [vmem:[%s1244_s3] sm:$0xf]  ;;  %s966_s17 = smov 12   ;;  %vm717_vm10 = vcmask 9216  }
  0x1f   :  { %754 = vmatprep.subr.mxu0 %v60_v1  ;;  %v735_v21 = vld [vmem:[%s1245_s4] ss:$0 sm:$0xff]  ;;  %s953_s4 = smov 4   ;;  %781 = vset.pattern.permute.xlu0 %v954_v38 }
  0x20   :  { %755 = vmatpush3.msra.mxu0 %v60_v1  ;;  %v160_v6 = vsub.s32 0, %v1018_v5  ;;  %v165_v7 = vsub.s32 1, %v1018_v5  ;;  %v171_v11 = vsub.s32 2, %v1018_v5  ;;  %v177_v15 = vsub.s32 3, %v1018_v5  ;;  %780 = vset.pattern.permute.xlu1 %v955_v39 }
  0x21   :  { %757 = vmatmul.mubr.msk.f32.vlgmr.msra.gmra.mxu0 %vm69_vm0, %v56_v3 }
  0x22   :  { %v1027_v9 = vrot.slane %v58_v8, %v160_v6  ;;  %v1031_v10 = vrot.slane %v58_v8, %v165_v7  ;;  %v1038_v14 = vrot.slane %v58_v8, %v171_v11  ;;  %v1044_v18 = vrot.slane %v58_v8, %v177_v15 }
  0x24   :  { %v162_v12 = vmul.f32 0.0, %v1027_v9  ;;  %v167_v13 = vmul.f32 0.0, %v1031_v10  ;;  %v173_v17 = vmul.f32 0.0, %v1038_v14  ;;  %v179_v20 = vmul.f32 0.0, %v1044_v18 }
  0x26   :  { %v168_v16 = vadd.f32 %v167_v13, %v162_v12 }
  0x28   :  { %v174_v19 = vadd.f32 %v173_v17, %v168_v16 }
  0x2a   :  { %v180_v24 = vadd.f32 %v179_v20, %v174_v19 }
  0xe1   :  { %v758_v22 = vpop.f32.mrf.mxu0 }
  0xe2   :  { %v1050_v23 = vadd.f32 %v758_v22, %v735_v21 }
  0xe3   :  { %v142_v25 = vpop.f32.mrf.mxu0 }
  0xe4   :  { %v1052_v26 = vadd.f32 %v735_v21, %v142_v25 }
  0xe6   :  { %v181_v27 = vadd.f32 %v180_v24, %v1052_v26 }
  0xe8   :  { %818 = vtanh.f32 %v181_v27  ;;  %v739_v29 = vmul.f32 -1.442695, %v181_v27 }
  0xea   :  { %820 = vpow2.f32 %v739_v29 }
  0xf5   :  { %v819_v28 = vpop.eup %818 }
  0xf6   :  { %191 = vrot.lane.b32.xlu0 %v819_v28, %s952_s14 }
  0xf7   :  { %v821_v30 = vpop.eup %820 }
  0xf8   :  { %v185_v31 = vadd.f32 1.0, %v821_v30 }
  0xfa   :  { %822 = vrcp.f32 %v185_v31 }
 0x107   :  { %v823_v32 = vpop.eup %822 }
 0x108   :  { %v189_v35 = vmul.f32 0.0, %v823_v32 }
 0x168   :  { %v192_v33 = vpop.permute.xlu0 %191 }
 0x169   :  { %v194_v34 = vmul.f32 %v823_v32, %v192_v33 }
 0x16b   :  { %196 = vrot.lane.b32.xlu0 %v194_v34, %s953_s4 }
 0x1dd   :  { %v197_v36 = vpop.permute.xlu0 %196 }
 0x1de   :  { %v199_v37 = vadd.f32 %v197_v36, %v189_v35 }
 0x1e0   :  { %824 = vtanh.f32 %v199_v37  ;;  %v248_v1 = vrot.slane %v199_v37, 6 }
 0x1ed   :  { %v825_v40 = vpop.eup %824 }
 0x1ee   :  { %202 = vrot.lane.b32.xlu1 %v825_v40, %s950_s28 }
 0x260   :  { %v203_v41 = vpop.permute.xlu1 %202 }
 0x261   :  { %v1060_v42 = vmul.f32 %v823_v32, %v203_v41 }
 0x263   :  { %219 = vperm.xlu0 %781, %v1060_v42   ;;  %214 = vperm.xlu1 %780, %v1060_v42  }
 0x267   :  { %782 = vset.pattern.permute.xlu1 %v956_v43 }
 0x268   :  { %225 = vperm.xlu1 %782, %v1060_v42  }
 0x26c   :  { %783 = vset.pattern.permute.xlu1 %v957_v44 }
 0x26d   :  { %231 = vperm.xlu1 %783, %v1060_v42  }
 0x271   :  { %784 = vset.pattern.permute.xlu1 %v955_v39 }
 0x2de   :  { %v215_v45 = vpop.permute.xlu1 %214  ;;  %v220_v46 = vpop.permute.xlu0 %219 }
 0x2df   :  { %v222_v47 = vmul.f32 %v220_v46, %v1031_v10  ;;  %v217_v48 = vmul.f32 %v215_v45, %v1027_v9 }
 0x2e1   :  { %v223_v51 = vadd.f32 %v222_v47, %v217_v48 }
 0x2e3   :  { %v226_v49 = vpop.permute.xlu1 %225 }
 0x2e4   :  { %v228_v50 = vmul.f32 %v226_v49, %v1038_v14 }
 0x2e6   :  { %v229_v53 = vadd.f32 %v228_v50, %v223_v51 }
 0x2e8   :  { %v232_v52 = vpop.permute.xlu1 %231 }
 0x2e9   :  { %v234_v54 = vmul.f32 %v232_v52, %v1044_v18 }
 0x2eb   :  { %v235_v55 = vadd.f32 %v234_v54, %v229_v53 }
 0x2ed   :  { %v237_v56 = vrot.slane %v235_v55, 6 }
 0x2ef   :  { %v239_v57 = vadd.f32 %v237_v56, %v1052_v26 }
 0x2f1   :  { %826 = vtanh.f32 %v239_v57  ;;  %v740_v59 = vmul.f32 -1.442695, %v239_v57 }
 0x2f3   :  { %828 = vpow2.f32 %v740_v59 }
 0x2fe   :  { %v827_v58 = vpop.eup %826 }
 0x2ff   :  { %252 = vrot.lane.b32.xlu0 %v827_v58, %s952_s14 }
 0x300   :  { %v829_v60 = vpop.eup %828 }
 0x301   :  { %v243_v61 = vadd.f32 1.0, %v829_v60 }
 0x303   :  { %830 = vrcp.f32 %v243_v61 }
 0x310   :  { %v831_v62 = vpop.eup %830 }
 0x311   :  { %v250_v2 = vmul.f32 %v831_v62, %v248_v1 }
 0x371   :  { %v253_v63 = vpop.permute.xlu0 %252 }
 0x372   :  { %v255_v0 = vmul.f32 %v831_v62, %v253_v63 }
 0x374   :  { %257 = vrot.lane.b32.xlu1 %v255_v0, %s953_s4 }
 0x3e6   :  { %v258_v3 = vpop.permute.xlu1 %257 }
 0x3e7   :  { %v260_v8 = vadd.f32 %v258_v3, %v250_v2 }
 0x3e9   :  { %832 = vtanh.f32 %v260_v8  ;;  %v316_v45 = vrot.slane %v260_v8, 6 }
 0x3f6   :  { %v833_v12 = vpop.eup %832 }
 0x3f7   :  { %263 = vrot.lane.b32.xlu0 %v833_v12, %s950_s28 }
 0x469   :  { %v264_v13 = vpop.permute.xlu0 %263 }
 0x46a   :  { %v1077_v16 = vmul.f32 %v831_v62, %v264_v13 }
 0x46c   :  { %287 = vperm.xlu0 %781, %v1077_v16   ;;  %282 = vperm.xlu1 %784, %v1077_v16  }
 0x470   :  { %786 = vset.pattern.permute.xlu0 %v957_v44  ;;  %785 = vset.pattern.permute.xlu1 %v956_v43 }
 0x471   :  { %299 = vperm.xlu0 %786, %v1077_v16   ;;  %293 = vperm.xlu1 %785, %v1077_v16  }
 0x475   :  { %788 = vset.pattern.permute.xlu0 %v954_v38  ;;  %787 = vset.pattern.permute.xlu1 %v955_v39 }
 0x4e7   :  { %v288_v17 = vpop.permute.xlu0 %287  ;;  %v283_v19 = vpop.permute.xlu1 %282 }
 0x4e8   :  { %v290_v20 = vmul.f32 %v288_v17, %v1031_v10  ;;  %v285_v21 = vmul.f32 %v283_v19, %v1027_v9 }
 0x4ea   :  { %v291_v25 = vadd.f32 %v290_v20, %v285_v21 }
 0x4ec   :  { %v300_v22 = vpop.permute.xlu0 %299  ;;  %v294_v24 = vpop.permute.xlu1 %293 }
 0x4ed   :  { %v296_v27 = vmul.f32 %v294_v24, %v1038_v14  ;;  %v302_v28 = vmul.f32 %v300_v22, %v1044_v18 }
 0x4ef   :  { %v297_v29 = vadd.f32 %v296_v27, %v291_v25 }
 0x4f1   :  { %v303_v30 = vadd.f32 %v302_v28, %v297_v29 }
 0x4f3   :  { %v305_v31 = vrot.slane %v303_v30, 6 }
 0x4f5   :  { %v307_v32 = vadd.f32 %v305_v31, %v1052_v26 }
 0x4f7   :  { %834 = vtanh.f32 %v307_v32  ;;  %v741_v34 = vmul.f32 -1.442695, %v307_v32 }
 0x4f9   :  { %836 = vpow2.f32 %v741_v34 }
 0x504   :  { %v835_v33 = vpop.eup %834 }
 0x505   :  { %320 = vrot.lane.b32.xlu1 %v835_v33, %s952_s14 }
 0x506   :  { %v837_v35 = vpop.eup %836 }
 0x507   :  { %v311_v36 = vadd.f32 1.0, %v837_v35 }
 0x509   :  { %838 = vrcp.f32 %v311_v36 }
 0x516   :  { %v839_v37 = vpop.eup %838 }
 0x517   :  { %v318_v46 = vmul.f32 %v839_v37, %v316_v45 }
 0x577   :  { %v321_v40 = vpop.permute.xlu1 %320 }
 0x578   :  { %v323_v41 = vmul.f32 %v839_v37, %v321_v40 }
 0x57a   :  { %325 = vrot.lane.b32.xlu1 %v323_v41, %s953_s4 }
 0x5ec   :  { %v326_v47 = vpop.permute.xlu1 %325 }
 0x5ed   :  { %v328_v48 = vadd.f32 %v326_v47, %v318_v46 }
 0x5ef   :  { %840 = vtanh.f32 %v328_v48  ;;  %v380_v19 = vrot.slane %v328_v48, 6 }
 0x5fc   :  { %v841_v49 = vpop.eup %840 }
 0x5fd   :  { %331 = vrot.lane.b32.xlu0 %v841_v49, %s950_s28 }
 0x66f   :  { %v332_v50 = vpop.permute.xlu0 %331 }
 0x670   :  { %v1095_v51 = vmul.f32 %v839_v37, %v332_v50 }
 0x672   :  { %351 = vperm.xlu0 %788, %v1095_v51   ;;  %346 = vperm.xlu1 %787, %v1095_v51  }
 0x676   :  { %789 = vset.pattern.permute.xlu1 %v956_v43 }
 0x677   :  { %357 = vperm.xlu1 %789, %v1095_v51  }
 0x67b   :  { %790 = vset.pattern.permute.xlu1 %v957_v44 }
 0x67c   :  { %363 = vperm.xlu1 %790, %v1095_v51  }
 0x680   :  { %791 = vset.pattern.permute.xlu1 %v955_v39 }
 0x6ed   :  { %v347_v52 = vpop.permute.xlu1 %346  ;;  %v352_v53 = vpop.permute.xlu0 %351 }
 0x6ee   :  { %v354_v54 = vmul.f32 %v352_v53, %v1031_v10  ;;  %v349_v55 = vmul.f32 %v347_v52, %v1027_v9 }
 0x6f0   :  { %v355_v58 = vadd.f32 %v354_v54, %v349_v55 }
 0x6f2   :  { %v358_v56 = vpop.permute.xlu1 %357 }
 0x6f3   :  { %v360_v57 = vmul.f32 %v358_v56, %v1038_v14 }
 0x6f5   :  { %v361_v60 = vadd.f32 %v360_v57, %v355_v58 }
 0x6f7   :  { %v364_v59 = vpop.permute.xlu1 %363 }
 0x6f8   :  { %v366_v61 = vmul.f32 %v364_v59, %v1044_v18 }
 0x6fa   :  { %v367_v62 = vadd.f32 %v366_v61, %v361_v60 }
 0x6fc   :  { %v369_v63 = vrot.slane %v367_v62, 6 }
 0x6fe   :  { %v371_v0 = vadd.f32 %v369_v63, %v1052_v26 }
 0x700   :  { %842 = vtanh.f32 %v371_v0  ;;  %v742_v2 = vmul.f32 -1.442695, %v371_v0 }
 0x702   :  { %844 = vpow2.f32 %v742_v2 }
 0x70d   :  { %v843_v1 = vpop.eup %842 }
 0x70e   :  { %384 = vrot.lane.b32.xlu0 %v843_v1, %s952_s14 }
 0x70f   :  { %v845_v3 = vpop.eup %844 }
 0x710   :  { %v375_v8 = vadd.f32 1.0, %v845_v3 }
 0x712   :  { %846 = vrcp.f32 %v375_v8 }
 0x71f   :  { %v847_v12 = vpop.eup %846 }
 0x720   :  { %v382_v20 = vmul.f32 %v847_v12, %v380_v19 }
 0x780   :  { %v385_v13 = vpop.permute.xlu0 %384 }
 0x781   :  { %v387_v17 = vmul.f32 %v847_v12, %v385_v13 }
 0x783   :  { %389 = vrot.lane.b32.xlu1 %v387_v17, %s953_s4 }
 0x7f5   :  { %v390_v21 = vpop.permute.xlu1 %389 }
 0x7f6   :  { %v392_v22 = vadd.f32 %v390_v21, %v382_v20 }
 0x7f8   :  { %848 = vtanh.f32 %v392_v22  ;;  %v444_v53 = vrot.slane %v392_v22, 6 }
 0x805   :  { %v849_v26 = vpop.eup %848 }
 0x806   :  { %395 = vrot.lane.b32.xlu0 %v849_v26, %s950_s28 }
 0x878   :  { %v396_v24 = vpop.permute.xlu0 %395 }
 0x879   :  { %v1112_v25 = vmul.f32 %v847_v12, %v396_v24 }
 0x87b   :  { %415 = vperm.xlu0 %788, %v1112_v25   ;;  %410 = vperm.xlu1 %791, %v1112_v25  }
 0x87f   :  { %793 = vset.pattern.permute.xlu0 %v957_v44  ;;  %792 = vset.pattern.permute.xlu1 %v956_v43 }
 0x880   :  { %427 = vperm.xlu0 %793, %v1112_v25   ;;  %421 = vperm.xlu1 %792, %v1112_v25  }
 0x884   :  { %795 = vset.pattern.permute.xlu0 %v954_v38  ;;  %794 = vset.pattern.permute.xlu1 %v955_v39 }
 0x8f6   :  { %v416_v27 = vpop.permute.xlu0 %415  ;;  %v411_v28 = vpop.permute.xlu1 %410 }
 0x8f7   :  { %v418_v29 = vmul.f32 %v416_v27, %v1031_v10  ;;  %v413_v30 = vmul.f32 %v411_v28, %v1027_v9 }
 0x8f9   :  { %v419_v33 = vadd.f32 %v418_v29, %v413_v30 }
 0x8fb   :  { %v428_v31 = vpop.permute.xlu0 %427  ;;  %v422_v32 = vpop.permute.xlu1 %421 }
 0x8fc   :  { %v424_v34 = vmul.f32 %v422_v32, %v1038_v14  ;;  %v430_v35 = vmul.f32 %v428_v31, %v1044_v18 }
 0x8fe   :  { %v425_v36 = vadd.f32 %v424_v34, %v419_v33 }
 0x900   :  { %v431_v37 = vadd.f32 %v430_v35, %v425_v36 }
 0x902   :  { %v433_v40 = vrot.slane %v431_v37, 6 }
 0x904   :  { %v435_v41 = vadd.f32 %v433_v40, %v1050_v23 }
 0x906   :  { %850 = vtanh.f32 %v435_v41  ;;  %v743_v46 = vmul.f32 -1.442695, %v435_v41 }
 0x908   :  { %852 = vpow2.f32 %v743_v46 }
 0x913   :  { %v851_v45 = vpop.eup %850 }
 0x914   :  { %448 = vrot.lane.b32.xlu1 %v851_v45, %s952_s14 }
 0x915   :  { %v853_v47 = vpop.eup %852 }
 0x916   :  { %v439_v48 = vadd.f32 1.0, %v853_v47 }
 0x918   :  { %854 = vrcp.f32 %v439_v48 }
 0x925   :  { %v855_v49 = vpop.eup %854 }
 0x926   :  { %v446_v54 = vmul.f32 %v855_v49, %v444_v53 }
 0x986   :  { %v449_v50 = vpop.permute.xlu1 %448 }
 0x987   :  { %v451_v52 = vmul.f32 %v855_v49, %v449_v50 }
 0x989   :  { %453 = vrot.lane.b32.xlu1 %v451_v52, %s953_s4 }
 0x9fb   :  { %v454_v55 = vpop.permute.xlu1 %453 }
 0x9fc   :  { %v456_v56 = vadd.f32 %v454_v55, %v446_v54 }
 0x9fe   :  { %856 = vtanh.f32 %v456_v56  ;;  %v508_v29 = vrot.slane %v456_v56, 6 }
 0xa0b   :  { %v857_v57 = vpop.eup %856 }
 0xa0c   :  { %459 = vrot.lane.b32.xlu0 %v857_v57, %s950_s28 }
 0xa7e   :  { %v460_v58 = vpop.permute.xlu0 %459 }
 0xa7f   :  { %v1130_v59 = vmul.f32 %v855_v49, %v460_v58 }
 0xa81   :  { %479 = vperm.xlu0 %795, %v1130_v59   ;;  %474 = vperm.xlu1 %794, %v1130_v59  }
 0xa85   :  { %796 = vset.pattern.permute.xlu1 %v956_v43 }
 0xa86   :  { %485 = vperm.xlu1 %796, %v1130_v59  }
 0xa8a   :  { %797 = vset.pattern.permute.xlu1 %v957_v44 }
 0xa8b   :  { %491 = vperm.xlu1 %797, %v1130_v59  }
 0xa8f   :  { %798 = vset.pattern.permute.xlu1 %v955_v39 }
 0xafc   :  { %v475_v60 = vpop.permute.xlu1 %474  ;;  %v480_v61 = vpop.permute.xlu0 %479 }
 0xafd   :  { %v482_v62 = vmul.f32 %v480_v61, %v1031_v10  ;;  %v477_v63 = vmul.f32 %v475_v60, %v1027_v9 }
 0xaff   :  { %v483_v2 = vadd.f32 %v482_v62, %v477_v63 }
 0xb01   :  { %v486_v0 = vpop.permute.xlu1 %485 }
 0xb02   :  { %v488_v1 = vmul.f32 %v486_v0, %v1038_v14 }
 0xb04   :  { %v489_v8 = vadd.f32 %v488_v1, %v483_v2 }
 0xb06   :  { %v492_v3 = vpop.permute.xlu1 %491 }
 0xb07   :  { %v494_v12 = vmul.f32 %v492_v3, %v1044_v18 }
 0xb09   :  { %v495_v13 = vadd.f32 %v494_v12, %v489_v8  ;;  %v57_v8 = vld [vmem:[%s1242_s1] sm:$0x3]  ;;  %s962_s1 = smov 116  }
 0xb0a   :  { %v738_v12 = vadd.s32 4294967295, %v57_v8 }
 0xb0b   :  { %v497_v17 = vrot.slane %v495_v13, 6  ;;  %v958_v13 = vmov 0  }
 0xb0d   :  { %v499_v19 = vadd.f32 %v497_v17, %v1050_v23 }
 0xb0f   :  { %858 = vtanh.f32 %v499_v19  ;;  %v744_v21 = vmul.f32 -1.442695, %v499_v19 }
 0xb11   :  { %860 = vpow2.f32 %v744_v21 }
 0xb1c   :  { %v859_v20 = vpop.eup %858 }
 0xb1d   :  { %512 = vrot.lane.b32.xlu0 %v859_v20, %s952_s14 }
 0xb1e   :  { %v861_v22 = vpop.eup %860 }
 0xb1f   :  { %v503_v26 = vadd.f32 1.0, %v861_v22 }
 0xb21   :  { %862 = vrcp.f32 %v503_v26 }
 0xb2e   :  { %v863_v24 = vpop.eup %862 }
 0xb2f   :  { %v510_v30 = vmul.f32 %v863_v24, %v508_v29 }
 0xb8f   :  { %v513_v27 = vpop.permute.xlu0 %512 }
 0xb90   :  { %v515_v28 = vmul.f32 %v863_v24, %v513_v27 }
 0xb92   :  { %517 = vrot.lane.b32.xlu1 %v515_v28, %s953_s4 }
 0xc04   :  { %v518_v31 = vpop.permute.xlu1 %517 }
 0xc05   :  { %v520_v32 = vadd.f32 %v518_v31, %v510_v30  ;;  %v959_v31 = vmov 2  }
 0xc07   :  { %864 = vtanh.f32 %v520_v32  ;;  %v576_v61 = vrot.slane %v520_v32, 6 }
 0xc14   :  { %v865_v33 = vpop.eup %864 }
 0xc15   :  { %523 = vrot.lane.b32.xlu0 %v865_v33, %s950_s28  ;;  %v963_v33 = vmov 4  }
 0xc87   :  { %v524_v34 = vpop.permute.xlu0 %523 }
 0xc88   :  { %v1147_v35 = vmul.f32 %v863_v24, %v524_v34  ;;  %v340_v34 = vrot.slane %v1095_v51, 4 }
 0xc8a   :  { %547 = vperm.xlu0 %795, %v1147_v35   ;;  %542 = vperm.xlu1 %798, %v1147_v35  }
 0xc8e   :  { %800 = vset.pattern.permute.xlu0 %v957_v44  ;;  %799 = vset.pattern.permute.xlu1 %v956_v43 }
 0xc8f   :  { %559 = vperm.xlu0 %800, %v1147_v35   ;;  %553 = vperm.xlu1 %799, %v1147_v35  }
 0xc93   :  { %802 = vset.pattern.permute.xlu0 %v954_v38  ;;  %801 = vset.pattern.permute.xlu1 %v955_v39 }
 0xd05   :  { %v548_v36 = vpop.permute.xlu0 %547  ;;  %v543_v37 = vpop.permute.xlu1 %542 }
 0xd06   :  { %v550_v40 = vmul.f32 %v548_v36, %v1031_v10  ;;  %v545_v41 = vmul.f32 %v543_v37, %v1027_v9 }
 0xd08   :  { %v551_v47 = vadd.f32 %v550_v40, %v545_v41 }
 0xd0a   :  { %v560_v45 = vpop.permute.xlu0 %559  ;;  %v554_v46 = vpop.permute.xlu1 %553 }
 0xd0b   :  { %v556_v48 = vmul.f32 %v554_v46, %v1038_v14  ;;  %v562_v49 = vmul.f32 %v560_v45, %v1044_v18 }
 0xd0d   :  { %v557_v50 = vadd.f32 %v556_v48, %v551_v47  ;;  %v965_v48 = vmov 6  }
 0xd0f   :  { %v563_v52 = vadd.f32 %v562_v49, %v557_v50  ;;  %v404_v49 = vrot.slane %v1112_v25, 6 }
 0xd11   :  { %v565_v53 = vrot.slane %v563_v52, 6 }
 0xd13   :  { %v567_v38 = vadd.f32 %v565_v53, %v1050_v23 }
 0xd15   :  { %866 = vtanh.f32 %v567_v38  ;;  %v745_v54 = vmul.f32 -1.442695, %v567_v38 }
 0xd17   :  { %868 = vpow2.f32 %v745_v54 }
 0xd22   :  { %v867_v39 = vpop.eup %866 }
 0xd23   :  { %580 = vrot.lane.b32.xlu1 %v867_v39, %s952_s14 }
 0xd24   :  { %v869_v55 = vpop.eup %868 }
 0xd25   :  { %v571_v56 = vadd.f32 1.0, %v869_v55 }
 0xd27   :  { %870 = vrcp.f32 %v571_v56 }
 0xd34   :  { %v871_v57 = vpop.eup %870 }
 0xd35   :  { %v578_v62 = vmul.f32 %v871_v57, %v576_v61 }
 0xd95   :  { %v581_v58 = vpop.permute.xlu1 %580 }
 0xd96   :  { %v583_v60 = vmul.f32 %v871_v57, %v581_v58 }
 0xd98   :  { %585 = vrot.lane.b32.xlu1 %v583_v60, %s953_s4 }
 0xe0a   :  { %v586_v63 = vpop.permute.xlu1 %585 }
 0xe0b   :  { %v1164_v0 = vadd.f32 %v586_v63, %v578_v62  ;;  %v532_v63 = vrot.slane %v1147_v35, 2 }
 0xe0d   :  { %872 = vtanh.f32 %v1164_v0  ;;  %v640_v50 = vrot.slane %v1164_v0, 6 }
 0xe1a   :  { %v873_v1 = vpop.eup %872 }
 0xe1b   :  { %591 = vrot.lane.b32.xlu0 %v873_v1, %s950_s28  ;;  %v967_v1 = vmov 7  }
 0xe8d   :  { %v592_v2 = vpop.permute.xlu0 %591 }
 0xe8e   :  { %v1168_v3 = vmul.f32 %v871_v57, %v592_v2 }
 0xe90   :  { %611 = vperm.xlu0 %802, %v1168_v3   ;;  %606 = vperm.xlu1 %801, %v1168_v3   ;;  %v600_v0 = vrot.slane %v1168_v3, 4 }
 0xe94   :  { %803 = vset.pattern.permute.xlu1 %v956_v43  ;;  %805 = vset.pattern.permute.xlu0 %v958_v13 }
 0xe95   :  { %617 = vperm.xlu1 %803, %v1168_v3   ;;  %155 = vperm.xlu0 %805, %v738_v12  }
 0xe99   :  { %804 = vset.pattern.permute.xlu1 %v957_v44  ;;  %808 = vset.pattern.permute.xlu0 %v959_v31 }
 0xe9a   :  { %623 = vperm.xlu1 %804, %v1168_v3  }
 0xe9e   :  { %806 = vset.pattern.permute.xlu1 %v958_v13 }
 0xf0b   :  { %v607_v17 = vpop.permute.xlu1 %606  ;;  %v612_v19 = vpop.permute.xlu0 %611 }
 0xf0c   :  { %v614_v20 = vmul.f32 %v612_v19, %v1031_v10  ;;  %v609_v21 = vmul.f32 %v607_v17, %v1027_v9  ;;  %v152_v10 = vand.u32 127, %v151_v4  ;;  %v272_v4 = vrot.slane %v1077_v16, 2 }
 0xf0d   :  { %v964_v16 = vmov 5  }
 0xf0e   :  { %v615_v26 = vadd.f32 %v614_v20, %v609_v21 }
 0xf10   :  { %v618_v22 = vpop.permute.xlu1 %617  ;;  %v156_v32 = vpop.permute.xlu0 %155 }
 0xf11   :  { %v620_v43 = vmul.f32 %v618_v22, %v1038_v14  ;;  %vm157_vm1 = vcmp.eq.s32.totalorder %v152_v10, %v156_v32  ;;  %v747_v10 = vld [vmem:[%s1247_s6] ss:$0 sm:$0xff] }
 0xf12   :  { %v1190_v14 = vsel %vm157_vm1, 1, %v958_v13 }
 0xf13   :  { %v621_v27 = vadd.f32 %v620_v43, %v615_v26 }
 0xf15   :  { %v624_v24 = vpop.permute.xlu1 %623 }
 0xf16   :  { %v626_v28 = vmul.f32 %v624_v24, %v1044_v18  ;;  %v960_v18 = vmov 1  }
 0xf18   :  { %v627_v29 = vadd.f32 %v626_v28, %v621_v27 }
 0xf1a   :  { %v629_v44 = vrot.slane %v627_v29, 6 }
 0xf1c   :  { %v631_v30 = vadd.f32 %v629_v44, %v1050_v23  ;;  %v961_v23 = vmov 3  }
 0xf1e   :  { %874 = vtanh.f32 %v631_v30  ;;  %v746_v36 = vmul.f32 -1.442695, %v631_v30 }
 0xf20   :  { %876 = vpow2.f32 %v746_v36 }
 0xf2b   :  { %v875_v9 = vpop.eup %874 }
 0xf2c   :  { %644 = vrot.lane.b32.xlu1 %v875_v9, %s952_s14 }
 0xf2d   :  { %v877_v37 = vpop.eup %876 }
 0xf2e   :  { %v635_v40 = vadd.f32 1.0, %v877_v37 }
 0xf30   :  { %208 = vperm.xlu1 %806, %v1190_v14   ;;  %878 = vrcp.f32 %v635_v40 }
 0xf34   :  { %807 = vset.pattern.permute.xlu1 %v960_v18 }
 0xf35   :  { %268 = vperm.xlu1 %807, %v1190_v14  }
 0xf39   :  { %809 = vset.pattern.permute.xlu1 %v961_v23 }
 0xf3a   :  { %400 = vperm.xlu1 %809, %v1190_v14  }
 0xf3d   :  { %v879_v41 = vpop.eup %878 }
 0xf3e   :  { %273 = vrot.lane.b32.xlu1 %v272_v4, %s962_s1  ;;  %v642_v52 = vmul.f32 %v879_v41, %v640_v50 }
 0xf3f   :  { %810 = vset.pattern.permute.xlu1 %v963_v33 }
 0xf42   :  { %341 = vrot.lane.b32.xlu1 %v340_v34, %s962_s1 }
 0xf46   :  { %464 = vperm.xlu1 %810, %v1190_v14  }
 0xf4a   :  { %812 = vset.pattern.permute.xlu1 %v965_v48 }
 0xf9e   :  { %v645_v45 = vpop.permute.xlu1 %644 }
 0xf9f   :  { %v647_v46 = vmul.f32 %v879_v41, %v645_v45 }
 0xfa1   :  { %649 = vrot.lane.b32.xlu0 %v647_v46, %s953_s4 }
 0xfa5   :  { %336 = vperm.xlu0 %808, %v1190_v14  }
 0xfa9   :  { %811 = vset.pattern.permute.xlu0 %v964_v16 }
 0xfab   :  { %v209_v47 = vpop.permute.xlu1 %208 }
 0xfac   :  { %vm210_vm2 = vcmp.eq.s32.totalorder %v209_v47, 1 }
 0xfad   :  { %v211_v51 = vsel %vm210_vm2, %v1060_v42, 0.0 }
 0xfae   :  { %277 = vrot.lane.b32.xlu0 %v211_v51, %s962_s1 }
 0xfb0   :  { %v269_v39 = vpop.permute.xlu1 %268 }
 0xfb1   :  { %vm270_vm3 = vcmp.eq.s32.totalorder %v269_v39, 1 }
 0xfb2   :  { %405 = vrot.lane.b32.xlu0 %v404_v49, %s962_s1 }
 0xfb5   :  { %v401_v54 = vpop.permute.xlu1 %400 }
 0xfb6   :  { %vm402_vm5 = vcmp.eq.s32.totalorder %v401_v54, 1 }
 0xfb9   :  { %v274_v56 = vpop.permute.xlu1 %273 }
 0xfbd   :  { %v342_v60 = vpop.permute.xlu1 %341 }
 0xfc1   :  { %v465_v2 = vpop.permute.xlu1 %464 }
 0xfc2   :  { %vm466_vm6 = vcmp.eq.s32.totalorder %v465_v2, 1 }
0x1013   :  { %v650_v53 = vpop.permute.xlu0 %649 }
0x1014   :  { %v652_v38 = vadd.f32 %v650_v53, %v642_v52 }
0x1016   :  { %880 = vtanh.f32 %v652_v38 }
0x1020   :  { %v337_v55 = vpop.permute.xlu0 %336 }
0x1021   :  { %vm338_vm4 = vcmp.eq.s32.totalorder %v337_v55, 1 }
0x1023   :  { %v881_v57 = vpop.eup %880 }
0x1024   :  { %v278_v42 = vpop.permute.xlu0 %277  ;;  %655 = vrot.lane.b32.xlu0 %v881_v57, %s950_s28 }
0x1025   :  { %v280_v58 = vsel %vm270_vm3, %v274_v56, %v278_v42 }
0x1026   :  { %v344_v61 = vsel %vm338_vm4, %v342_v60, %v280_v58 }
0x1028   :  { %528 = vperm.xlu0 %811, %v1190_v14   ;;  %v406_v25 = vpop.permute.xlu0 %405 }
0x1029   :  { %v408_v62 = vsel %vm402_vm5, %v406_v25, %v344_v61 }
0x102a   :  { %468 = vrot.lane.b32.xlu1 %v408_v62, %s966_s17 }
0x102c   :  { %533 = vrot.lane.b32.xlu0 %v532_v63, %s962_s1 }
0x102d   :  { %814 = vset.pattern.permute.xlu0 %v958_v13 }
0x102e   :  { %596 = vperm.xlu1 %812, %v1190_v14  }
0x1030   :  { %601 = vrot.lane.b32.xlu0 %v600_v0, %s962_s1 }
0x1032   :  { %813 = vset.pattern.permute.xlu1 %v967_v1 }
0x1033   :  { %660 = vperm.xlu1 %813, %v1190_v14  }
0x1037   :  { %815 = vset.pattern.permute.xlu1 %v960_v18 }
0x1096   :  { %v656_v8 = vpop.permute.xlu0 %655 }
0x1097   :  { %v658_v35 = vmul.f32 %v879_v41, %v656_v8 }
0x1099   :  { %v664_v13 = vrot.slane %v658_v35, 6 }
0x109c   :  { %v469_v12 = vpop.permute.xlu1 %468 }
0x109d   :  { %v471_v17 = vsel %vm466_vm6, %v1130_v59, %v469_v12  ;;  %v59_v59 = vld [vmem:[%s1246_s5] sm:$0xf]  ;;  %s968_s5 = smov [#allocation7]  }
0x109e   :  { %537 = vrot.lane.b32.xlu1 %v471_v17, %s962_s1  ;;  %v684_v29 = vrot.slane %v59_v59, %v160_v6  ;;  %v694_v44 = vrot.slane %v59_v59, %v165_v7  ;;  %v704_v9 = vrot.slane %v59_v59, %v171_v11  ;;  %s725_s22 = sshll.u32 %s968_s5, 4  ;;  %s726_s22 = int_to_ptr.vmem [resolvable:$true] %s725_s22 }
0x109f   :  { %s922_s6 = scalar_lea.vmem %s726_s22, 32  ;;  %p927_p11 = scmp.lt.s32.totalorder %s726_s22, %s726_s22 }
0x10a0   :  { %p923_p10 = scmp.ne.s32.totalorder %s726_s22, %s922_s6  ;;  %p928_p12 = scmp.lt.s32.totalorder %s922_s6, %s922_s6 }
0x10a2   :  { %665 = vrot.lane.b32.xlu1 %v664_v13, %s962_s1  ;;  %p929_p13 = por %p928_p12, %p927_p11 }
0x10a3   :  { %v529_v19 = vpop.permute.xlu0 %528 }
0x10a4   :  { %vm530_vm7 = vcmp.eq.s32.totalorder %v529_v19, 1  ;;  %p930_p0 = pnand %p929_p13, %p923_p10 }
0x10a7   :  { %v534_v21 = vpop.permute.xlu0 %533 }
0x10a9   :  { %v597_v3 = vpop.permute.xlu1 %596 }
0x10aa   :  { %vm598_vm8 = vcmp.eq.s32.totalorder %v597_v3, 1 }
0x10ab   :  { %v602_v26 = vpop.permute.xlu0 %601 }
0x10ae   :  { %v661_v20 = vpop.permute.xlu1 %660 }
0x10af   :  { %vm662_vm9 = vcmp.eq.s32.totalorder %v661_v20, 1 }
0x1110   :  { %v538_v22 = vpop.permute.xlu1 %537 }
0x1111   :  { %v540_v43 = vsel %vm530_vm7, %v534_v21, %v538_v22 }
0x1112   :  { %v604_v24 = vsel %vm598_vm8, %v602_v26, %v540_v43 }
0x1114   :  { %v666_v27 = vpop.permute.xlu1 %665 }
0x1115   :  { %v668_v28 = vsel %vm662_vm9, %v666_v27, %v604_v24 }
0x1116   :  { %688 = vperm.xlu1 %815, %v668_v28   ;;  %678 = vperm.xlu0 %814, %v668_v28  }
0x111a   :  { %816 = vset.pattern.permute.xlu1 %v959_v31  ;;  %817 = vset.pattern.permute.xlu0 %v961_v23  ;;  %v714_v23 = vrot.slane %v59_v59, %v177_v15 }
0x111b   :  { %698 = vperm.xlu1 %816, %v668_v28   ;;  %708 = vperm.xlu0 %817, %v668_v28  }
0x1191   :  { %v689_v30 = vpop.permute.xlu1 %688  ;;  %v679_v31 = vpop.permute.xlu0 %678 }
0x1192   :  { %v685_v32 = vmul.f32 %v684_v29, %v679_v31  ;;  %v695_v14 = vmul.f32 %v694_v44, %v689_v30 }
0x1194   :  { %v686_v18 = vadd.f32 %v747_v10, %v685_v32 }
0x1196   :  { %v699_v4 = vpop.permute.xlu1 %698  ;;  %v696_v6 = vadd.f32 %v695_v14, %v686_v18  ;;  %v709_v33 = vpop.permute.xlu0 %708 }
0x1197   :  { %v705_v34 = vmul.f32 %v704_v9, %v699_v4  ;;  %v715_v36 = vmul.f32 %v714_v23, %v709_v33 }
0x1199   :  { %v706_v7 = vadd.f32 %v705_v34, %v696_v6 }
0x119b   :  { %v716_v37 = vadd.f32 %v715_v36, %v706_v7 }
0x119d   :  { %718 = vst.msk [vmem:[#allocation7] sm:$0x3] %vm717_vm10, %v716_v37 }
0x119e   :  { %933 = shalt.err (!%p930_p0)
}
0x119f   :  { %728 = dma.vmem_to_hbm [thread:$0]  %s726_s22, 32, %s1248_s7, [#allocation4]  }
0x11a0   :  { %946 = dma.done.wait [#allocation4], 32  }
0x11a1   :  { %947 = vsyncadd [#allocation4], 4294967264 }
0x11a2   :  { %732 = vsyncpa [#allocation3], 1 }
0x11a3   :  { %733 = vsyncpa [#allocation6], 1 }
0x11a4   :  { %734 = vsyncpa [#allocation4], 1 }

</bundles_post_ra>
